<compile_context>
chip_gen: v7x
topology: tpu7x:2x2x1
jax: 0.10.0
libtpu: 0.0.40
codegen_flags: <defaults>
</compile_context>

<pallas_src>
import math
from functools import partial

import jax
import jax.numpy as jnp
from jax import lax
from jax.experimental import pallas as pl
from jax.experimental.pallas import tpu as pltpu

F32 = jnp.float32
BF16 = jnp.bfloat16
LN_EPS = 1e-12
_SQRT_2_OVER_PI = 0.7978845608028654


def _row_tile(m, cap=512):
    """Largest row-tile (multiple of 8) dividing m, capped at `cap`."""
    if m <= cap:
        return m
    for t in range(cap, 7, -8):
        if m % t == 0:
            return t
    return m


# ----------------------------------------------------------------------------
# Pallas kernels
# ----------------------------------------------------------------------------
def _layernorm_kernel(x_ref, g_ref, b_ref, o_ref, *, eps):
    """LayerNorm over last dim.  x:[tm,H]  g,b:[1,H]."""
    x = x_ref[...]
    mean = jnp.mean(x, axis=-1, keepdims=True)
    var = jnp.mean((x - mean) ** 2, axis=-1, keepdims=True)
    y = (x - mean) * lax.rsqrt(var + eps)
    o_ref[...] = (y * g_ref[...] + b_ref[...]).astype(o_ref.dtype)


def pallas_layernorm(x, gamma, beta, eps=LN_EPS):
    M, H = x.shape
    tm = _row_tile(M)
    g2 = gamma.reshape(1, H).astype(F32)
    b2 = beta.reshape(1, H).astype(F32)
    return pl.pallas_call(
        partial(_layernorm_kernel, eps=eps),
        out_shape=jax.ShapeDtypeStruct((M, H), F32),
        grid=(M // tm,),
        in_specs=[
            pl.BlockSpec((tm, H), lambda i: (i, 0)),
            pl.BlockSpec((1, H), lambda i: (0, 0)),
            pl.BlockSpec((1, H), lambda i: (0, 0)),
        ],
        out_specs=pl.BlockSpec((tm, H), lambda i: (i, 0)),
        compiler_params=pltpu.CompilerParams(dimension_semantics=("parallel",)),
    )(x.astype(F32), g2, b2)


def _attn_block_kernel(x_ref, qw_ref, qb_ref, kw_ref, kb_ref, vw_ref, vb_ref,
                       ow_ref, ob_ref, g_ref, b_ref, mask_ref, o_ref,
                       *, nh, scale, eps):
    """Fused self-attention block for one batch element.

    x:[1,S,H] f32; q/k/v weights:[nh,H,hd] bf16, biases:[nh,1,hd] f32;
    out-proj weight:[nh,hd,H] bf16, bias:[1,H]; LN gamma/beta:[1,H];
    mask:[1,1,S] additive.  Writes LayerNorm(x + attn_out).
    """
    x = x_ref[0]                               # (S, H) f32 (kept for residual)
    x_bf = x.astype(BF16)                      # MXU inputs in bf16
    mask = mask_ref[0]                         # (1, S)
    acc = jnp.zeros(x.shape, F32)              # output-proj accumulator
    for h in range(nh):                        # static unroll over heads
        qh = jnp.dot(x_bf, qw_ref[h], preferred_element_type=F32) + qb_ref[h]
        kh = jnp.dot(x_bf, kw_ref[h], preferred_element_type=F32) + kb_ref[h]
        vh = jnp.dot(x_bf, vw_ref[h], preferred_element_type=F32) + vb_ref[h]
        # scores: contract head dim of both operands -> no explicit transpose
        s = lax.dot_general(qh.astype(BF16), kh.astype(BF16),
                            (((1,), (1,)), ((), ())),
                            preferred_element_type=F32) * scale       # (S, S)
        s = s + mask
        s = s - jnp.max(s, axis=-1, keepdims=True)
        p = jnp.exp(s)
        p = p * pl.reciprocal(jnp.sum(p, axis=-1, keepdims=True), approx=True)
        ctx = jnp.dot(p.astype(BF16), vh.astype(BF16),
                      preferred_element_type=F32)                     # (S, hd)
        # per-head slice of the output projection, accumulated in f32
        acc = acc + jnp.dot(ctx.astype(BF16), ow_ref[h],
                            preferred_element_type=F32)               # (S, H)
    y = x + acc + ob_ref[...]                  # residual + out-proj bias
    mean = jnp.mean(y, axis=-1, keepdims=True)
    var = jnp.mean((y - mean) ** 2, axis=-1, keepdims=True)
    yn = (y - mean) * lax.rsqrt(var + eps)
    o_ref[0] = (yn * g_ref[...] + b_ref[...]).astype(o_ref.dtype)


def pallas_attention_block(x_bsh, mask_b1s, lw, nh, hd, eps=LN_EPS):
    B, S, H = x_bsh.shape
    scale = 1.0 / math.sqrt(hd)
    return pl.pallas_call(
        partial(_attn_block_kernel, nh=nh, scale=scale, eps=eps),
        out_shape=jax.ShapeDtypeStruct((B, S, H), F32),
        grid=(B,),
        in_specs=[
            pl.BlockSpec((1, S, H), lambda b: (b, 0, 0)),
            pl.BlockSpec((nh, H, hd), lambda b: (0, 0, 0)),
            pl.BlockSpec((nh, 1, hd), lambda b: (0, 0, 0)),
            pl.BlockSpec((nh, H, hd), lambda b: (0, 0, 0)),
            pl.BlockSpec((nh, 1, hd), lambda b: (0, 0, 0)),
            pl.BlockSpec((nh, H, hd), lambda b: (0, 0, 0)),
            pl.BlockSpec((nh, 1, hd), lambda b: (0, 0, 0)),
            pl.BlockSpec((nh, hd, H), lambda b: (0, 0, 0)),
            pl.BlockSpec((1, H), lambda b: (0, 0)),
            pl.BlockSpec((1, H), lambda b: (0, 0)),
            pl.BlockSpec((1, H), lambda b: (0, 0)),
            pl.BlockSpec((1, 1, S), lambda b: (b, 0, 0)),
        ],
        out_specs=pl.BlockSpec((1, S, H), lambda b: (b, 0, 0)),
        compiler_params=pltpu.CompilerParams(dimension_semantics=("parallel",)),
    )(x_bsh.astype(F32),
      lw["qw"], lw["qb"], lw["kw"], lw["kb"], lw["vw"], lw["vb"],
      lw["ow"], lw["ob"], lw["ln1_g"], lw["ln1_b"], mask_b1s)


def _ffn_block_kernel(x_ref, iw_ref, ib_ref, fw_ref, fb_ref, g_ref, b_ref,
                      o_ref, *, eps):
    """Fused FFN block: LN(x + W2 @ gelu(W1 @ x + b1) + b2).  x:[tm,H]."""
    x = x_ref[...]                             # f32 (kept for residual)
    h = jnp.dot(x.astype(BF16), iw_ref[...],
                preferred_element_type=F32) + ib_ref[...]
    # tanh-approx GELU (EUP path); exact-erf reference deviates at ~1e-3.
    h = 0.5 * h * (1.0 + jnp.tanh(_SQRT_2_OVER_PI * (h + 0.044715 * h * h * h)))
    f = jnp.dot(h.astype(BF16), fw_ref[...],
                preferred_element_type=F32) + fb_ref[...]
    y = x + f
    mean = jnp.mean(y, axis=-1, keepdims=True)
    var = jnp.mean((y - mean) ** 2, axis=-1, keepdims=True)
    yn = (y - mean) * lax.rsqrt(var + eps)
    o_ref[...] = (yn * g_ref[...] + b_ref[...]).astype(o_ref.dtype)


def pallas_ffn_block(x, lw, eps=LN_EPS):
    M, H = x.shape
    I = lw["iw"].shape[1]
    tm = _row_tile(M)
    return pl.pallas_call(
        partial(_ffn_block_kernel, eps=eps),
        out_shape=jax.ShapeDtypeStruct((M, H), F32),
        grid=(M // tm,),
        in_specs=[
            pl.BlockSpec((tm, H), lambda i: (i, 0)),
            pl.BlockSpec((H, I), lambda i: (0, 0)),
            pl.BlockSpec((1, I), lambda i: (0, 0)),
            pl.BlockSpec((I, H), lambda i: (0, 0)),
            pl.BlockSpec((1, H), lambda i: (0, 0)),
            pl.BlockSpec((1, H), lambda i: (0, 0)),
            pl.BlockSpec((1, H), lambda i: (0, 0)),
        ],
        out_specs=pl.BlockSpec((tm, H), lambda i: (i, 0)),
        compiler_params=pltpu.CompilerParams(dimension_semantics=("parallel",)),
    )(x.astype(F32), lw["iw"], lw["ib"], lw["fw"], lw["fb"],
      lw["ln2_g"], lw["ln2_b"])


def _pool_cls_kernel(cls_ref, pw_ref, pb_ref, fw_ref, fb_ref, o_ref):
    """pooled = tanh(cls @ Wp + bp); logits = pooled @ Wf + bf."""
    cls = cls_ref[...].astype(BF16)
    pooled = jnp.tanh(jnp.dot(cls, pw_ref[...],
                              preferred_element_type=F32) + pb_ref[...])
    # TODO(synk): nn.Dropout(p=0.5) is identity in eval mode; train-mode RNG
    # dropout is not reproduced here.
    logits = jnp.dot(pooled.astype(BF16), fw_ref[...],
                     preferred_element_type=F32) + fb_ref[...]
    o_ref[...] = logits.astype(o_ref.dtype)


def pallas_pool_classify(cls, pool_w, pool_b, fc_w, fc_b):
    B, H = cls.shape
    O = fc_w.shape[1]
    # Output last dim O (=2) is far below a lane; negligible FLOPs, single call.
    return pl.pallas_call(
        _pool_cls_kernel,
        out_shape=jax.ShapeDtypeStruct((B, O), F32),
        grid=(1,),
        in_specs=[
            pl.BlockSpec((B, H), lambda i: (0, 0)),
            pl.BlockSpec((H, H), lambda i: (0, 0)),
            pl.BlockSpec((1, H), lambda i: (0, 0)),
            pl.BlockSpec((H, O), lambda i: (0, 0)),
            pl.BlockSpec((1, O), lambda i: (0, 0)),
        ],
        out_specs=pl.BlockSpec((B, O), lambda i: (0, 0)),
    )(cls.astype(F32), pool_w.astype(BF16), pool_b.reshape(1, H).astype(F32),
      fc_w.astype(BF16), fc_b.reshape(1, O).astype(F32))


# ----------------------------------------------------------------------------
# Parameter construction (deterministic, synthetic) and per-layer packing
# ----------------------------------------------------------------------------
def init_params(key, cfg):
    def nrm(k, shape, scale=0.02):
        return scale * jax.random.normal(k, shape, dtype=F32)

    H, I = cfg["hidden"], cfg["intermediate"]
    keys = jax.random.split(key, 8 + cfg["layers"])
    params = {
        "word_emb": nrm(keys[0], (cfg["vocab"], H)),
        "pos_emb": nrm(keys[1], (cfg["max_pos"], H)),
        "type_emb": nrm(keys[2], (cfg["type_vocab"], H)),
        "emb_ln_g": jnp.ones((H,), F32),
        "emb_ln_b": jnp.zeros((H,), F32),
        "pool_w": nrm(keys[3], (H, H)),
        "pool_b": jnp.zeros((H,), F32),
        "fc_w": nrm(keys[4], (H, cfg["output_size"])),
        "fc_b": jnp.zeros((cfg["output_size"],), F32),
        # metadata_fc: declared in __init__ but unused in forward
        "meta_w": nrm(keys[5], (cfg["meta_size"], cfg["meta_hidden"])),
        "meta_b": jnp.zeros((cfg["meta_hidden"],), F32),
        "layers": [],
    }
    for li in range(cfg["layers"]):
        ks = jax.random.split(keys[8 + li], 6)
        params["layers"].append({
            "q_w": nrm(ks[0], (H, H)), "q_b": jnp.zeros((H,), F32),
            "k_w": nrm(ks[1], (H, H)), "k_b": jnp.zeros((H,), F32),
            "v_w": nrm(ks[2], (H, H)), "v_b": jnp.zeros((H,), F32),
            "o_w": nrm(ks[3], (H, H)), "o_b": jnp.zeros((H,), F32),
            "ln1_g": jnp.ones((H,), F32), "ln1_b": jnp.zeros((H,), F32),
            "i_w": nrm(ks[4], (H, I)), "i_b": jnp.zeros((I,), F32),
            "f_w": nrm(ks[5], (I, H)), "f_b": jnp.zeros((H,), F32),
            "ln2_g": jnp.ones((H,), F32), "ln2_b": jnp.zeros((H,), F32),
        })
    return params


def _prepare_layer(lp, nh, hd, H):
    """Pack a layer's weights for the fused kernels (per-head bf16 slabs)."""
    def per_head_in(w):    # (H, H) -> (nh, H, hd): column block per head
        return w.reshape(H, nh, hd).transpose(1, 0, 2).astype(BF16)

    def per_head_bias(b):  # (H,) -> (nh, 1, hd)
        return b.reshape(nh, 1, hd).astype(F32)

    return {
        "qw": per_head_in(lp["q_w"]), "qb": per_head_bias(lp["q_b"]),
        "kw": per_head_in(lp["k_w"]), "kb": per_head_bias(lp["k_b"]),
        "vw": per_head_in(lp["v_w"]), "vb": per_head_bias(lp["v_b"]),
        # output-projection rows are in concat-head order -> (nh, hd, H)
        "ow": lp["o_w"].reshape(nh, hd, H).astype(BF16),
        "ob": lp["o_b"].reshape(1, H).astype(F32),
        "ln1_g": lp["ln1_g"].reshape(1, H).astype(F32),
        "ln1_b": lp["ln1_b"].reshape(1, H).astype(F32),
        "iw": lp["i_w"].astype(BF16),
        "ib": lp["i_b"].reshape(1, -1).astype(F32),
        "fw": lp["f_w"].astype(BF16),
        "fb": lp["f_b"].reshape(1, H).astype(F32),
        "ln2_g": lp["ln2_g"].reshape(1, H).astype(F32),
        "ln2_b": lp["ln2_b"].reshape(1, H).astype(F32),
    }


# ----------------------------------------------------------------------------
# Forward pass (mirrors FakeNewsClassifier.forward)
# ----------------------------------------------------------------------------
def fake_news_classifier_forward(params, inputs, metadatas, attention_mask, cfg):
    del metadatas  # metadata_fc exists in __init__ but is not used in forward
    B, S = inputs.shape
    H, nh = cfg["hidden"], cfg["heads"]
    hd = H // nh

    # --- BERT embeddings (gather = plain-JAX glue, layernorm = Pallas) ------
    x = (params["word_emb"][inputs]
         + params["pos_emb"][:S][None, :, :]
         + params["type_emb"][0][None, None, :])                  # (B, S, H)
    x = pallas_layernorm(x.reshape(B * S, H),
                         params["emb_ln_g"], params["emb_ln_b"])  # (B*S, H)

    # additive attention mask, one row per batch: (B, 1, S)
    mask_b1s = ((1.0 - attention_mask.astype(F32)) * -1e9).reshape(B, 1, S)

    # --- encoder layers: one fused attention kernel + one fused FFN kernel ---
    for lp in params["layers"]:
        lw = _prepare_layer(lp, nh, hd, H)
        x = pallas_attention_block(x.reshape(B, S, H), mask_b1s, lw, nh, hd)
        x = pallas_ffn_block(x.reshape(B * S, H), lw)

    # --- pooler (tanh on [CLS]) + dropout(identity) + classifier, fused ------
    cls = x.reshape(B, S, H)[:, 0, :]                              # (B, H)
    logits = pallas_pool_classify(cls, params["pool_w"], params["pool_b"],
                                  params["fc_w"], params["fc_b"])  # (B, out)
    return logits


# ----------------------------------------------------------------------------
# Main
# ----------------------------------------------------------------------------
if __name__ == "__main__":
    cfg = dict(
        vocab=64, max_pos=16, type_vocab=2,
        hidden=32, heads=2, intermediate=64, layers=2,
        output_size=2, meta_size=5, meta_hidden=8,
    )
    B, S = 2, 8

    key = jax.random.PRNGKey(0)
    k_params, k_ids, k_meta = jax.random.split(key, 3)

    params = init_params(k_params, cfg)
    inputs = jax.random.randint(k_ids, (B, S), 0, cfg["vocab"], dtype=jnp.int32)
    metadatas = jax.random.normal(k_meta, (B, cfg["meta_size"]), dtype=F32)
    attention_mask = jnp.array([[1, 1, 1, 1, 1, 1, 0, 0],
                                [1, 1, 1, 1, 0, 0, 0, 0]], dtype=jnp.int32)

    logits = fake_news_classifier_forward(params, inputs, metadatas,
                                          attention_mask, cfg)
    logits = jax.block_until_ready(logits)
    assert logits.shape == (B, cfg["output_size"])
    assert logits.dtype == jnp.float32
    print("KERNEL_OK")
</pallas_src>

<mosaic_0001>
module attributes {stable_mosaic.version = 11 : i64} {
  func.func @_layernorm_kernel(%arg0: i32, %arg1: memref<16x32xf32, #tpu.memory_space<vmem>>, %arg2: memref<1x32xf32, #tpu.memory_space<vmem>>, %arg3: memref<1x32xf32, #tpu.memory_space<vmem>>, %arg4: memref<16x32xf32, #tpu.memory_space<vmem>>) attributes {dimension_semantics = [#tpu.dimension_semantics<parallel>], iteration_bounds = array<i64: 1>, scalar_prefetch = 0 : i64, scratch_operands = 0 : i64, tpu.core_type = #tpu.core_type<tc>, window_params = [{transform_indices = @transform_0, window_bounds = array<i64: 16, 32>}, {pipeline_mode = #tpu.pipeline_mode<synchronous>, transform_indices = @transform_1, window_bounds = array<i64: 1, 32>}, {pipeline_mode = #tpu.pipeline_mode<synchronous>, transform_indices = @transform_2, window_bounds = array<i64: 1, 32>}, {transform_indices = @transform_3, window_bounds = array<i64: 16, 32>}]} {
    %c0 = arith.constant 0 : index
    %c0_0 = arith.constant 0 : index
    %0 = vector.load %arg1[%c0, %c0_0] : memref<16x32xf32, #tpu.memory_space<vmem>>, vector<16x32xf32>
    %cst = arith.constant dense<0.000000e+00> : vector<16xf32>
    %1 = vector.multi_reduction <add>, %0, %cst [1] : vector<16x32xf32> to vector<16xf32>
    %2 = vector.shape_cast %1 : vector<16xf32> to vector<16x1xf32>
    %cst_1 = arith.constant 3.200000e+01 : f32
    %3 = vector.broadcast %cst_1 : f32 to vector<16x1xf32>
    %4 = arith.divf %2, %3 : vector<16x1xf32>
    %5 = vector.broadcast %4 : vector<16x1xf32> to vector<16x32xf32>
    %6 = arith.subf %0, %5 : vector<16x32xf32>
    %7 = arith.mulf %6, %6 : vector<16x32xf32>
    %cst_2 = arith.constant dense<0.000000e+00> : vector<16xf32>
    %8 = vector.multi_reduction <add>, %7, %cst_2 [1] : vector<16x32xf32> to vector<16xf32>
    %9 = vector.shape_cast %8 : vector<16xf32> to vector<16x1xf32>
    %cst_3 = arith.constant 3.200000e+01 : f32
    %10 = vector.broadcast %cst_3 : f32 to vector<16x1xf32>
    %11 = arith.divf %9, %10 : vector<16x1xf32>
    %12 = vector.broadcast %4 : vector<16x1xf32> to vector<16x32xf32>
    %13 = arith.subf %0, %12 : vector<16x32xf32>
    %cst_4 = arith.constant 9.99999996E-13 : f32
    %14 = vector.broadcast %cst_4 : f32 to vector<16x1xf32>
    %15 = arith.addf %11, %14 : vector<16x1xf32>
    %16 = math.rsqrt %15 : vector<16x1xf32>
    %17 = vector.broadcast %16 : vector<16x1xf32> to vector<16x32xf32>
    %18 = arith.mulf %13, %17 : vector<16x32xf32>
    %c0_5 = arith.constant 0 : index
    %c0_6 = arith.constant 0 : index
    %19 = vector.load %arg2[%c0_5, %c0_6] : memref<1x32xf32, #tpu.memory_space<vmem>>, vector<1x32xf32>
    %20 = vector.broadcast %19 : vector<1x32xf32> to vector<16x32xf32>
    %21 = arith.mulf %18, %20 : vector<16x32xf32>
    %c0_7 = arith.constant 0 : index
    %c0_8 = arith.constant 0 : index
    %22 = vector.load %arg3[%c0_7, %c0_8] : memref<1x32xf32, #tpu.memory_space<vmem>>, vector<1x32xf32>
    %23 = vector.broadcast %22 : vector<1x32xf32> to vector<16x32xf32>
    %24 = arith.addf %21, %23 : vector<16x32xf32>
    %c0_9 = arith.constant 0 : index
    %c0_10 = arith.constant 0 : index
    %25 = vector.load %arg4[%c0_9, %c0_10] : memref<16x32xf32, #tpu.memory_space<vmem>>, vector<16x32xf32>
    tpu.vector_store %arg4[%c0_9, %c0_10], %24 {strides = array<i32>} : memref<16x32xf32, #tpu.memory_space<vmem>>, vector<16x32xf32>,
    return
  }
  func.func @transform_0(%arg0: i32) -> (i32, i32) {
    %c0_i32 = arith.constant 0 : i32
    %c0_i32_0 = arith.constant 0 : i32
    return %arg0, %c0_i32 : i32, i32
  }
  func.func @transform_1(%arg0: i32) -> (i32, i32) {
    %c0_i32 = arith.constant 0 : i32
    %c0_i32_0 = arith.constant 0 : i32
    %c0_i32_1 = arith.constant 0 : i32
    return %c0_i32, %c0_i32_0 : i32, i32
  }
  func.func @transform_2(%arg0: i32) -> (i32, i32) {
    %c0_i32 = arith.constant 0 : i32
    %c0_i32_0 = arith.constant 0 : i32
    %c0_i32_1 = arith.constant 0 : i32
    return %c0_i32, %c0_i32_0 : i32, i32
  }
  func.func @transform_3(%arg0: i32) -> (i32, i32) {
    %c0_i32 = arith.constant 0 : i32
    %c0_i32_0 = arith.constant 0 : i32
    return %arg0, %c0_i32 : i32, i32
  }
}

</mosaic_0001>

<bundles_post_ra>
// kernel: tpu_custom_call.1
= control target key start
LH: loop header
LB: loop body
LE: loop exit
PB: predicated region body
PF: predicated region fallthrough
CT: control target
= control target key end

     0   :  { %8 = vsyncpa [#allocation3], 0  ;;  %s220_s0 = inlined_call_operand.hbm [shape: f32[16,32], index: 0, kind: input, shape index: {}]   ;;  %s221_s1 = inlined_call_operand.vmem [shape: f32[1,32], index: 1, kind: input, shape index: {}]   ;;  %s222_s2 = inlined_call_operand.vmem [shape: f32[1,32], index: 2, kind: input, shape index: {}]   ;;  %s223_s3 = inlined_call_operand.hbm [shape: f32[16,32], index: 3, kind: output, shape index: {}]  }
   0x1   :  { %9 = vsyncpa [#allocation4], 0  ;;  %s154_s12 = smov [#allocation2]   ;;  %s106_s16 = scalar_lea.hbm %s220_s0, 256 }
   0x2   :  { %s15_s13 = sshll.u32 %s154_s12, 4  ;;  %p107_p0 = scmp.ne.s32.totalorder %s220_s0, %s106_s16  ;;  %s16_s13 = int_to_ptr.vmem [resolvable:$true] %s15_s13 }
   0x3   :  { %p110_p1 = scmp.lt.u32.totalorder %s106_s16, %s220_s0 }
   0x5   :  { %p112_p2 = pnand %p110_p1, %p107_p0 }
   0x7   :  { %115 = shalt.err (!%p112_p2)
}
   0x8   :  { %s116_s21 = scalar_lea.vmem %s16_s13, 256  ;;  %p121_p4 = scmp.lt.s32.totalorder %s16_s13, %s16_s13 }
   0x9   :  { %p117_p3 = scmp.ne.s32.totalorder %s16_s13, %s116_s21  ;;  %p122_p5 = scmp.lt.s32.totalorder %s116_s21, %s116_s21 }
   0xb   :  { %p123_p6 = por %p122_p5, %p121_p4 }
   0xd   :  { %p124_p7 = pnand %p123_p6, %p117_p3 }
   0xf   :  { %127 = shalt.err (!%p124_p7)
}
  0x10   :  { %s155_s22 = smov 128   ;;  %s156_s23 = smov 8  }
  0x11   :  { %21 = dma.hbm_to_vmem [thread:$0]  %s220_s0, 256, %s16_s13, [#allocation3], %s155_s22, %s155_s22, %s156_s23  }
  0x12   :  { %150 = dma.done.wait [#allocation3], 256  }
  0x13   :  { %151 = vsyncadd [#allocation3], 4294967040  ;;  %vm31_vm0 = vcmask 261120   ;;  %v29_v0 = vld [vmem:[#allocation2] sm:$0xff]  ;;  %v30_v1 = vld [vmem:[#allocation2 + $0x8] sm:$0xff]  ;;  %s157_s29 = smov [#allocation5]  }
  0x14   :  { %v32_v2 = vsel %vm31_vm0, %v29_v0, 0.0  ;;  %v35_v3 = vsel %vm31_vm0, %v30_v1, 0.0  ;;  %v96_v21 = vld [vmem:[%s221_s1] ss:$0 sm:$0xff]  ;;  %s84_s30 = sshll.u32 %s157_s29, 4  ;;  %s85_s30 = int_to_ptr.vmem [resolvable:$true] %s84_s30 }
  0x15   :  { %33 = vadd.xlane.f32.xlu0 %v32_v2  ;;  %v97_v23 = vld [vmem:[%s222_s2] ss:$0 sm:$0xff]  ;;  %s128_s4 = scalar_lea.vmem %s85_s30, 256  ;;  %p133_p9 = scmp.lt.s32.totalorder %s85_s30, %s85_s30 }
  0x16   :  { %p129_p8 = scmp.ne.s32.totalorder %s85_s30, %s128_s4  ;;  %p134_p10 = scmp.lt.s32.totalorder %s128_s4, %s128_s4 }
  0x18   :  { %p135_p11 = por %p134_p10, %p133_p9 }
  0x19   :  { %36 = vadd.xlane.f32.xlu0 %v35_v3 }
  0x1a   :  { %p136_p12 = pnand %p135_p11, %p129_p8 }
  0xa2   :  { %v34_v4 = vpop.xlane.xlu0 %33 }
  0xa3   :  { %v39_v5 = vmul.f32 0.03125, %v34_v4 }
  0xa5   :  { %v41_v6 = vsub.f32 %v29_v0, %v39_v5 }
  0xa6   :  { %v37_v7 = vpop.xlane.xlu0 %36 }
  0xa7   :  { %v40_v8 = vmul.f32 0.03125, %v37_v7  ;;  %v43_v9 = vmul.f32 %v41_v6, %v41_v6 }
  0xa9   :  { %v42_v10 = vsub.f32 %v30_v1, %v40_v8  ;;  %v45_v11 = vsel %vm31_vm0, %v43_v9, 0.0 }
  0xaa   :  { %46 = vadd.xlane.f32.xlu1 %v45_v11 }
  0xab   :  { %v44_v12 = vmul.f32 %v42_v10, %v42_v10 }
  0xad   :  { %v48_v13 = vsel %vm31_vm0, %v44_v12, 0.0 }
  0xae   :  { %49 = vadd.xlane.f32.xlu1 %v48_v13 }
 0x137   :  { %v47_v14 = vpop.xlane.xlu1 %46 }
 0x138   :  { %v51_v15 = vmul.f32 0.03125, %v47_v14 }
 0x13a   :  { %v53_v16 = vadd.f32 1e-12, %v51_v15 }
 0x13b   :  { %v50_v17 = vpop.xlane.xlu1 %49 }
 0x13c   :  { %102 = vrsqrt.f32 %v53_v16  ;;  %v52_v18 = vmul.f32 0.03125, %v50_v17 }
 0x13e   :  { %v54_v19 = vadd.f32 1e-12, %v52_v18 }
 0x140   :  { %104 = vrsqrt.f32 %v54_v19 }
 0x146   :  { %v103_v20 = vpop.eup %102 }
 0x147   :  { %v57_v22 = vmul.f32 %v103_v20, %v41_v6 }
 0x149   :  { %v66_v24 = vmul.f32 %v96_v21, %v57_v22 }
 0x14a   :  { %v105_v25 = vpop.eup %104 }
 0x14b   :  { %v58_v26 = vmul.f32 %v105_v25, %v42_v10  ;;  %v75_v27 = vadd.f32 %v97_v23, %v66_v24 }
 0x14d   :  { %v67_v28 = vmul.f32 %v96_v21, %v58_v26  ;;  %77 = vst.msk [vmem:[#allocation5] sm:$0xff] %vm31_vm0, %v75_v27 }
 0x14f   :  { %v76_v29 = vadd.f32 %v97_v23, %v67_v28 }
 0x151   :  { %78 = vst.msk [vmem:[#allocation5 + $0x8] sm:$0xff] %vm31_vm0, %v76_v29 }
 0x152   :  { %139 = shalt.err (!%p136_p12)
}
 0x153   :  { %s140_s5 = scalar_lea.hbm %s223_s3, 256 }
 0x154   :  { %p141_p13 = scmp.ne.s32.totalorder %s223_s3, %s140_s5  ;;  %p144_p0 = scmp.lt.u32.totalorder %s140_s5, %s223_s3 }
 0x156   :  { %p146_p1 = pnand %p144_p0, %p141_p13 }
 0x158   :  { %149 = shalt.err (!%p146_p1)
}
 0x159   :  { %90 = dma.vmem_to_hbm [thread:$0]  %s85_s30, 256, %s223_s3, [#allocation4], %s155_s22, %s155_s22, %s156_s23  }
 0x15a   :  { %152 = dma.done.wait [#allocation4], 256  }
 0x15b   :  { %153 = vsyncadd [#allocation4], 4294967040 }
 0x15c   :  { %94 = vsyncpa [#allocation3], 1 }
 0x15d   :  { %95 = vsyncpa [#allocation4], 1 }

</bundles_post_ra>
